<compile_context>
chip_gen: v7x
topology: tpu7x:2x2x1
jax: 0.10.0
libtpu: 0.0.40
codegen_flags: <defaults>
</compile_context>

<pallas_src>
import jax
import jax.numpy as jnp
from jax.experimental import pallas as pl
from jax.experimental.pallas import tpu as pltpu

IN_DIM = 31
HID_DIM = 100
HID_PAD = 128      # hidden dim padded to a full lane tile
OUT_DIM = 2
MAX_TILE_B = 4096  # rows per grid step (multiple of 8); ~8-9 MiB VMEM double-buffered


def _round_up(n, m):
    return ((n + m - 1) // m) * m


def txtvis_kernel(x_ref, w1_ref, b1_ref, wd_ref, bd_ref, o_ref):
    # x_ref : [TILE_B, 31]   (VMEM, per-grid-step tile; final block may be ragged)
    # w1_ref: [31, 128]      (resident: index_map -> (0,0) every step)
    # b1_ref: [1, 128]
    # wd_ref: [1, 128]       (w2[:,1] - w2[:,0], hidden-padded)
    # bd_ref: [1, 1]         (b2[1] - b2[0])
    # o_ref : [TILE_B, 2]
    x = x_ref[...]

    # fc1 + ReLU (MXU matmul, f32 accumulate). Padded hidden lanes stay exactly 0.
    h = jnp.dot(x, w1_ref[...], preferred_element_type=jnp.float32) + b1_ref[...]
    h = jnp.maximum(h, 0.0)

    # fc2 folded to a logit difference: d = l1 - l0 (VPU mul + XLU lane reduce, off the MXU).
    d = jnp.sum(h * wd_ref[...], axis=-1, keepdims=True) + bd_ref[...]   # [TILE_B, 1]

    # 2-class softmax, cancellation-free: p1 = 1/(1+e), p0 = e/(1+e) with e = exp(-d).
    e = jnp.exp(-d)                      # EUP
    p1 = 1.0 / (1.0 + e)
    p0 = e * p1

    o_ref[:, 0:1] = p0.astype(o_ref.dtype)
    o_ref[:, 1:2] = p1.astype(o_ref.dtype)


def prepare_params(w1, b1, w2, b2):
    """One-time parameter prep (hoisted out of the per-call path).

    PyTorch layout in:  w1 [100,31], b1 [100], w2 [2,100], b2 [2].
    Returns kernel layout:
        w1_p [31,128], b1_p [1,128]  (hidden zero-padded 100 -> 128),
        wd_p [1,128] = pad(w2[1,:] - w2[0,:]),
        bd_p [1,1]   = b2[1] - b2[0].
    Numerics of the forward pass are unchanged.
    """
    w1_t = jnp.asarray(w1, jnp.float32).T                       # [31, 100]
    w1_p = jnp.zeros((IN_DIM, HID_PAD), jnp.float32).at[:, :HID_DIM].set(w1_t)
    b1_p = jnp.zeros((1, HID_PAD), jnp.float32).at[0, :HID_DIM].set(
        jnp.asarray(b1, jnp.float32))
    w2_f = jnp.asarray(w2, jnp.float32)                         # [2, 100]
    wd = w2_f[1, :] - w2_f[0, :]                                # [100]
    wd_p = jnp.zeros((1, HID_PAD), jnp.float32).at[0, :HID_DIM].set(wd)
    b2_f = jnp.asarray(b2, jnp.float32)
    bd_p = (b2_f[1] - b2_f[0]).reshape(1, 1)                    # [1, 1]
    return w1_p, b1_p, wd_p, bd_p


def txtvis_forward(x, params, *, max_tile_b=MAX_TILE_B):
    """x: [B, 31] f32; params from prepare_params. Returns softmax probs [B, 2]."""
    w1_p, b1_p, wd_p, bd_p = params
    x = jnp.asarray(x, jnp.float32)
    B = x.shape[0]

    # Tile size: multiple of 8, no larger than needed, capped for VMEM/pipelining.
    tile_b = min(max_tile_b, _round_up(max(B, 8), 8))
    grid = (pl.cdiv(B, tile_b),)   # ragged final block handled by Pallas masking (no jnp.pad copy)

    out = pl.pallas_call(
        txtvis_kernel,
        out_shape=jax.ShapeDtypeStruct((B, OUT_DIM), jnp.float32),
        grid=grid,
        in_specs=[
            # x tiled over batch; last dim equals full array dim -> (8,128) rule OK.
            pl.BlockSpec((tile_b, IN_DIM), lambda i: (i, 0)),
            # Weights/biases stay resident (same block every grid step -> no re-DMA).
            pl.BlockSpec((IN_DIM, HID_PAD), lambda i: (0, 0)),
            pl.BlockSpec((1, HID_PAD), lambda i: (0, 0)),
            pl.BlockSpec((1, HID_PAD), lambda i: (0, 0)),
            pl.BlockSpec((1, 1), lambda i: (0, 0)),
        ],
        out_specs=pl.BlockSpec((tile_b, OUT_DIM), lambda i: (i, 0)),
        compiler_params=pltpu.CompilerParams(
            dimension_semantics=("parallel",),   # dual-TC sharding on v7x; no-op v5e/v6e
            vmem_limit_bytes=32 * 1024 * 1024,   # headroom above v5e's 16 MiB default, < v7x 64 MiB
        ),
    )(x, w1_p, b1_p, wd_p, bd_p)

    return out


def init_params(key):
    """Deterministic init matching PyTorch nn.Linear shapes:
    fc1.weight [100,31], fc1.bias [100], fc2.weight [2,100], fc2.bias [2]."""
    k1, k2, k3, k4 = jax.random.split(key, 4)
    bound1 = 1.0 / jnp.sqrt(IN_DIM)
    bound2 = 1.0 / jnp.sqrt(HID_DIM)
    w1 = jax.random.uniform(k1, (HID_DIM, IN_DIM), jnp.float32, -bound1, bound1)
    b1 = jax.random.uniform(k2, (HID_DIM,), jnp.float32, -bound1, bound1)
    w2 = jax.random.uniform(k3, (OUT_DIM, HID_DIM), jnp.float32, -bound2, bound2)
    b2 = jax.random.uniform(k4, (OUT_DIM,), jnp.float32, -bound2, bound2)
    return w1, b1, w2, b2


def _reference(x, w1, b1, w2, b2):
    h = jnp.maximum(x @ w1.T + b1, 0.0)
    return jax.nn.softmax(h @ w2.T + b2, axis=-1)


if __name__ == "__main__":
    key = jax.random.PRNGKey(0)
    kp, kx = jax.random.split(key)
    w1, b1, w2, b2 = init_params(kp)
    params = prepare_params(w1, b1, w2, b2)   # one-time prep (transpose + pad + fc2 fold)

    # Small batch, exact tile.
    B = 8
    x = jax.random.normal(kx, (B, IN_DIM), jnp.float32)
    out = jax.block_until_ready(txtvis_forward(x, params))
    ref = _reference(x, w1, b1, w2, b2)
    assert out.shape == (B, OUT_DIM)
    assert jnp.allclose(out, ref, atol=1e-5, rtol=1e-5)
    assert jnp.allclose(jnp.sum(out, axis=-1), 1.0, atol=1e-5)

    # Batch that is not a multiple of 8 (ragged single block, no jnp.pad path).
    B2 = 19
    x2 = jax.random.normal(jax.random.PRNGKey(1), (B2, IN_DIM), jnp.float32)
    out2 = jax.block_until_ready(txtvis_forward(x2, params))
    ref2 = _reference(x2, w1, b1, w2, b2)
    assert out2.shape == (B2, OUT_DIM)
    assert jnp.allclose(out2, ref2, atol=1e-5, rtol=1e-5)

    # Force a multi-step grid with a ragged final block (small tile override).
    out3 = jax.block_until_ready(txtvis_forward(x2, params, max_tile_b=8))
    assert out3.shape == (B2, OUT_DIM)
    assert jnp.allclose(out3, ref2, atol=1e-5, rtol=1e-5)

    print("KERNEL_OK")
</pallas_src>

<mosaic_0001>
module attributes {stable_mosaic.version = 11 : i64} {
  func.func @txtvis_kernel(%arg0: i32, %arg1: memref<8x31xf32, #tpu.memory_space<vmem>>, %arg2: memref<31x128xf32, #tpu.memory_space<vmem>>, %arg3: memref<1x128xf32, #tpu.memory_space<vmem>>, %arg4: memref<1x128xf32, #tpu.memory_space<vmem>>, %arg5: memref<1x1xf32, #tpu.memory_space<vmem>>, %arg6: memref<8x2xf32, #tpu.memory_space<vmem>>) attributes {dimension_semantics = [#tpu.dimension_semantics<parallel>], iteration_bounds = array<i64: 1>, scalar_prefetch = 0 : i64, scratch_operands = 0 : i64, tpu.core_type = #tpu.core_type<tc>, window_params = [{transform_indices = @transform_0, window_bounds = array<i64: 8, 31>}, {pipeline_mode = #tpu.pipeline_mode<synchronous>, transform_indices = @transform_1, window_bounds = array<i64: 31, 128>}, {pipeline_mode = #tpu.pipeline_mode<synchronous>, transform_indices = @transform_2, window_bounds = array<i64: 1, 128>}, {pipeline_mode = #tpu.pipeline_mode<synchronous>, transform_indices = @transform_3, window_bounds = array<i64: 1, 128>}, {pipeline_mode = #tpu.pipeline_mode<synchronous>, transform_indices = @transform_4, window_bounds = array<i64: 1, 1>}, {transform_indices = @transform_5, window_bounds = array<i64: 8, 2>}]} {
    %c0 = arith.constant 0 : index
    %c0_0 = arith.constant 0 : index
    %0 = vector.load %arg1[%c0, %c0_0] : memref<8x31xf32, #tpu.memory_space<vmem>>, vector<8x31xf32>
    %c0_1 = arith.constant 0 : index
    %c0_2 = arith.constant 0 : index
    %1 = vector.load %arg2[%c0_1, %c0_2] : memref<31x128xf32, #tpu.memory_space<vmem>>, vector<31x128xf32>
    %cst = arith.constant dense<0.000000e+00> : vector<8x128xf32>
    %2 = tpu.matmul %0, %1, %cst {dimension_numbers = #tpu.dot_dimension_numbers<[1], [0], [0], [1], [0, 0, 1, 1], [], []>} : vector<8x31xf32>, vector<31x128xf32>, vector<8x128xf32> -> vector<8x128xf32>
    %c0_3 = arith.constant 0 : index
    %c0_4 = arith.constant 0 : index
    %3 = vector.load %arg3[%c0_3, %c0_4] : memref<1x128xf32, #tpu.memory_space<vmem>>, vector<1x128xf32>
    %4 = vector.broadcast %3 : vector<1x128xf32> to vector<8x128xf32>
    %5 = arith.addf %2, %4 : vector<8x128xf32>
    %cst_5 = arith.constant 0.000000e+00 : f32
    %6 = vector.broadcast %cst_5 : f32 to vector<8x128xf32>
    %7 = arith.maximumf %5, %6 : vector<8x128xf32>
    %c0_6 = arith.constant 0 : index
    %c0_7 = arith.constant 0 : index
    %8 = vector.load %arg4[%c0_6, %c0_7] : memref<1x128xf32, #tpu.memory_space<vmem>>, vector<1x128xf32>
    %9 = vector.broadcast %8 : vector<1x128xf32> to vector<8x128xf32>
    %10 = arith.mulf %7, %9 : vector<8x128xf32>
    %cst_8 = arith.constant dense<0.000000e+00> : vector<8xf32>
    %11 = vector.multi_reduction <add>, %10, %cst_8 [1] : vector<8x128xf32> to vector<8xf32>
    %12 = vector.shape_cast %11 : vector<8xf32> to vector<8x1xf32>
    %c0_9 = arith.constant 0 : index
    %c0_10 = arith.constant 0 : index
    %13 = vector.load %arg5[%c0_9, %c0_10] : memref<1x1xf32, #tpu.memory_space<vmem>>, vector<1x1xf32>
    %14 = vector.broadcast %13 : vector<1x1xf32> to vector<8x1xf32>
    %15 = arith.addf %12, %14 : vector<8x1xf32>
    %cst_11 = arith.constant 0.000000e+00 : f32
    %16 = vector.broadcast %cst_11 : f32 to vector<8x1xf32>
    %17 = arith.subf %16, %15 : vector<8x1xf32>
    %18 = math.exp %17 : vector<8x1xf32>
    %cst_12 = arith.constant 1.000000e+00 : f32
    %19 = vector.broadcast %cst_12 : f32 to vector<8x1xf32>
    %20 = arith.addf %19, %18 : vector<8x1xf32>
    %cst_13 = arith.constant 1.000000e+00 : f32
    %21 = vector.broadcast %cst_13 : f32 to vector<8x1xf32>
    %22 = arith.divf %21, %20 : vector<8x1xf32>
    %23 = arith.mulf %18, %22 : vector<8x1xf32>
    %c0_14 = arith.constant 0 : index
    %c0_15 = arith.constant 0 : index
    %24 = vector.load %arg6[%c0_14, %c0_15] : memref<8x2xf32, #tpu.memory_space<vmem>>, vector<8x1xf32>
    tpu.vector_store %arg6[%c0_14, %c0_15], %23 {strides = array<i32>} : memref<8x2xf32, #tpu.memory_space<vmem>>, vector<8x1xf32>,
    %c0_16 = arith.constant 0 : index
    %c1 = arith.constant 1 : index
    %25 = vector.load %arg6[%c0_16, %c1] : memref<8x2xf32, #tpu.memory_space<vmem>>, vector<8x1xf32>
    tpu.vector_store %arg6[%c0_16, %c1], %22 {strides = array<i32>} : memref<8x2xf32, #tpu.memory_space<vmem>>, vector<8x1xf32>,
    return
  }
  func.func @transform_0(%arg0: i32) -> (i32, i32) {
    %c0_i32 = arith.constant 0 : i32
    %c0_i32_0 = arith.constant 0 : i32
    return %arg0, %c0_i32 : i32, i32
  }
  func.func @transform_1(%arg0: i32) -> (i32, i32) {
    %c0_i32 = arith.constant 0 : i32
    %c0_i32_0 = arith.constant 0 : i32
    %c0_i32_1 = arith.constant 0 : i32
    return %c0_i32, %c0_i32_0 : i32, i32
  }
  func.func @transform_2(%arg0: i32) -> (i32, i32) {
    %c0_i32 = arith.constant 0 : i32
    %c0_i32_0 = arith.constant 0 : i32
    %c0_i32_1 = arith.constant 0 : i32
    return %c0_i32, %c0_i32_0 : i32, i32
  }
  func.func @transform_3(%arg0: i32) -> (i32, i32) {
    %c0_i32 = arith.constant 0 : i32
    %c0_i32_0 = arith.constant 0 : i32
    %c0_i32_1 = arith.constant 0 : i32
    return %c0_i32, %c0_i32_0 : i32, i32
  }
  func.func @transform_4(%arg0: i32) -> (i32, i32) {
    %c0_i32 = arith.constant 0 : i32
    %c0_i32_0 = arith.constant 0 : i32
    %c0_i32_1 = arith.constant 0 : i32
    return %c0_i32, %c0_i32_0 : i32, i32
  }
  func.func @transform_5(%arg0: i32) -> (i32, i32) {
    %c0_i32 = arith.constant 0 : i32
    %c0_i32_0 = arith.constant 0 : i32
    return %arg0, %c0_i32 : i32, i32
  }
}

</mosaic_0001>

<bundles_post_ra>
// kernel: tpu_custom_call.1
= control target key start
LH: loop header
LB: loop body
LE: loop exit
PB: predicated region body
PF: predicated region fallthrough
CT: control target
= control target key end

     0   :  { %s352_s0 = inlined_call_operand.hbm [shape: f32[8,31], index: 0, kind: input, shape index: {}]   ;;  %s353_s1 = inlined_call_operand.hbm [shape: f32[31,128], index: 1, kind: input, shape index: {}]   ;;  %s354_s2 = inlined_call_operand.vmem [shape: f32[1,128], index: 2, kind: input, shape index: {}]   ;;  %s355_s3 = inlined_call_operand.vmem [shape: f32[1,128], index: 3, kind: input, shape index: {}]   ;;  %s356_s4 = inlined_call_operand.<no memory space> [shape: f32[1,1], index: 4, kind: input, shape index: {}]   ;;  %s357_s5 = inlined_call_operand.vmem [shape: f32[8,2], index: 5, kind: output, shape index: {}]  }
   0x1   :  { %v10_v0 = vstv %s356_s4 }
   0x2   :  { %11 = vst [vmem:[#allocation2] sm:$0x1] %v10_v0 }
   0x3   :  { %12 = vsyncpa [#allocation4], 0 }
   0x4   :  { %13 = vsyncpa [#allocation6], 0  ;;  %s267_s20 = smov [#allocation3]   ;;  %s268_s22 = smov [#allocation5]  }
   0x5   :  { %s20_s21 = sshll.u32 %s267_s20, 4  ;;  %s29_s23 = sshll.u32 %s268_s22, 4  ;;  %s21_s21 = int_to_ptr.vmem [resolvable:$true] %s20_s21  ;;  %s309_s23 = int_to_ptr.vmem [resolvable:$true] %s29_s23 }
   0x6   :  { %s219_s26 = scalar_lea.hbm %s352_s0, 128 }
   0x7   :  { %p220_p0 = scmp.ne.s32.totalorder %s352_s0, %s219_s26  ;;  %p223_p1 = scmp.lt.u32.totalorder %s219_s26, %s352_s0 }
   0x9   :  { %p225_p2 = pnand %p223_p1, %p220_p0 }
   0xb   :  { %228 = shalt.err (!%p225_p2)
}
   0xc   :  { %s229_s30 = scalar_lea.vmem %s21_s21, 128  ;;  %p234_p4 = scmp.lt.s32.totalorder %s21_s21, %s21_s21 }
   0xd   :  { %p230_p3 = scmp.ne.s32.totalorder %s21_s21, %s229_s30  ;;  %p235_p5 = scmp.lt.s32.totalorder %s229_s30, %s229_s30 }
   0xf   :  { %p236_p6 = por %p235_p5, %p234_p4 }
  0x11   :  { %p237_p7 = pnand %p236_p6, %p230_p3 }
  0x13   :  { %240 = shalt.err (!%p237_p7)
}
  0x14   :  { %23 = dma.hbm_to_vmem [thread:$0]  %s352_s0, 128, %s21_s21, [#allocation4]  }
  0x15   :  { %s241_s10 = scalar_lea.hbm %s353_s1, 512 }
  0x16   :  { %p242_p8 = scmp.ne.s32.totalorder %s353_s1, %s241_s10  ;;  %p245_p9 = scmp.lt.u32.totalorder %s241_s10, %s353_s1 }
  0x18   :  { %p247_p10 = pnand %p245_p9, %p242_p8 }
  0x1a   :  { %250 = shalt.err (!%p247_p10)
}
  0x1b   :  { %s251_s15 = scalar_lea.vmem %s309_s23, 512  ;;  %p256_p12 = scmp.lt.s32.totalorder %s309_s23, %s309_s23 }
  0x1c   :  { %p252_p11 = scmp.ne.s32.totalorder %s309_s23, %s251_s15  ;;  %p257_p13 = scmp.lt.s32.totalorder %s251_s15, %s251_s15 }
  0x1e   :  { %p258_p0 = por %p257_p13, %p256_p12 }
  0x20   :  { %p259_p1 = pnand %p258_p0, %p252_p11 }
  0x22   :  { %262 = shalt.err (!%p259_p1)
}
  0x23   :  { %s269_s0 = smov 128   ;;  %s270_s16 = smov 8  }
  0x24   :  { %35 = dma.hbm_to_vmem [thread:$0]  %s353_s1, 512, %s309_s23, [#allocation6], %s269_s0, %s269_s0, %s270_s16  }
  0x25   :  { %263 = dma.done.wait [#allocation4], 128  }
  0x26   :  { %264 = vsyncadd [#allocation4], 4294967168 }
  0x27   :  { %265 = dma.done.wait [#allocation6], 512  }
  0x28   :  { %266 = vsyncadd [#allocation6], 4294966784  ;;  %v271_v1 = vmov 0.0|0.0   ;;  %vm272_vm0 = vmmov 0   ;;  %v273_v2 = vmov 0.0   ;;  %v49_v3 = vld [vmem:[#allocation5] sm:$0xff] }
  0x29   :  { %199 = vmatprep.subr.bf16.mxu0 %v271_v1  ;;  %196 = vmatprep.mubr.msk.f32.mxu0 %vm272_vm0, %v273_v2  ;;  %v50_v4 = vld [vmem:[#allocation5 + $0x8] sm:$0xff]  ;;  %v51_v5 = vld [vmem:[#allocation5 + $0x10] sm:$0xff]  ;;  %v52_v7 = vld [vmem:[#allocation5 + $0x18] sm:$0x7f]  ;;  %vm64_vm1 = vcmask 1046528   ;;  %vm274_vm2 = vmmov 1  }
  0x2a   :  { %v200_v6 = vpack.c.bf16 %v50_v4, %v49_v3  ;;  %v203_v8 = vpack.c.bf16 %v52_v7, %v51_v5  ;;  %vm204_vm3 = vmpackc.low %vm64_vm1, %vm274_vm2  ;;  %v48_v9 = vld [vmem:[#allocation3] sm:$0xff]  ;;  %vm60_vm4 = vcmask 252928   ;;  %v178_v10 = vld [vmem:[%s354_s2] ss:$0 sm:$0xff]  ;;  %vm164_vm5 = vcmask 7168   ;;  %s275_s2 = smov 1  }
  0x2b   :  { %v181_v14 = vld [vmem:[%s355_s3] ss:$0 sm:$0xff]  ;;  %vm170_vm6 = vcmask 15368  }
  0x2c   :  { %201 = vmatpush3.bf16.msra.mxu0 %v200_v6  ;;  %v182_v17 = vld [vmem:[#allocation2] ss:$0 sm:$0xff] }
  0x2d   :  { %202 = vmatprep.subr.bf16.mxu0 %v271_v1 }
  0x30   :  { %205 = vmatpush3.bf16.msk.msra.mxu0 %vm204_vm3, %v203_v8 }
  0x33   :  { %197 = vmatmul.mubr.msk.f32.vlgmr.msra.gmra.mrb[0].mxu0 %vm60_vm4, %v48_v9 }
 0x106   :  { %v134_v11 = vpop.f32.mrb[0].mxu0 }
 0x107   :  { %v135_v12 = vadd.f32 %v178_v10, %v134_v11  ;;  %v198_v13 = vpop.f32.mrb[1].mxu0 }
 0x109   :  { %v138_v15 = vmax.f32 %v135_v12, 0.0 }
 0x10b   :  { %v146_v16 = vmul.f32 %v181_v14, %v138_v15 }
 0x10d   :  { %147 = vadd.xlane.f32.xlu0 %v146_v16 }
 0x19a   :  { %v148_v18 = vpop.xlane.xlu0 %147 }
 0x19b   :  { %v156_v19 = vadd.f32 %v182_v17, %v148_v18 }
 0x19d   :  { %v157_v20 = vsub.f32 0.0, %v156_v19 }
 0x19f   :  { %v158_v21 = vmul.f32 1.442695, %v157_v20 }
 0x1a1   :  { %215 = vpow2.f32 %v158_v21 }
 0x1ab   :  { %v216_v22 = vpop.eup %215 }
 0x1ac   :  { %v160_v23 = vadd.f32 1.0, %v216_v22 }
 0x1ae   :  { %217 = vrcp.f32 %v160_v23 }
 0x1b8   :  { %v218_v24 = vpop.eup %217 }
 0x1b9   :  { %167 = vrot.lane.b32.xlu0 %v218_v24, %s275_s2  ;;  %v163_v25 = vmul.f32 %v218_v24, %v216_v22 }
 0x1bb   :  { %165 = vst.msk [vmem:[%s357_s5] sm:$0xff] %vm164_vm5, %v163_v25 }
 0x22b   :  { %v168_v26 = vpop.permute.xlu0 %167 }
 0x22c   :  { %171 = vst.msk [vmem:[%s357_s5] sm:$0xff] %vm170_vm6, %v168_v26 }
 0x22d   :  { %176 = vsyncpa [#allocation4], 1 }
 0x22e   :  { %177 = vsyncpa [#allocation6], 1 }

</bundles_post_ra>
